<compile_context>
chip_gen: v5e
topology: v5e:2x2
jax: 0.10.0
libtpu: 0.0.40
codegen_flags: <defaults>
</compile_context>

<pallas_src>
import math

import jax
import jax.numpy as jnp
from jax import lax
from jax.experimental import pallas as pl
from jax.experimental.pallas import tpu as pltpu


# ---------------------------------------------------------------------------
# Kernel: per batch tile, apply the Householder chain as compact-WY panels.
# ---------------------------------------------------------------------------
def _make_ortho_kernel(dim_padded, panel):
    n_panels = dim_padded // panel  # dim_padded is padded to a multiple of panel

    def kernel(x_ref, v_ref, w_ref, b_ref, o_ref):
        """x_ref: (tm, D); v_ref: (D, Dp); w_ref: (Dp, D); b_ref: (1, D); o_ref: (tm, D)."""
        x = x_ref[...].astype(jnp.float32)
        for p in range(n_panels):                       # static unroll; 2 MXU dots/panel
            lo = p * panel
            vp = v_ref[:, lo:lo + panel]                # (D, P)  reflector columns
            wp = w_ref[lo:lo + panel, :]                # (P, D)  T_p @ V_p^T
            y = jnp.dot(x, vp, preferred_element_type=jnp.float32)       # MXU
            x = x - jnp.dot(y, wp, preferred_element_type=jnp.float32)   # MXU
        o_ref[...] = (x + b_ref[...]).astype(o_ref.dtype)                # bias once

    return kernel


# ---------------------------------------------------------------------------
# Wrapper-side (parameter-only) compact-WY precompute — hoisted out of the kernel.
# ---------------------------------------------------------------------------
def _wy_panels(U, panel):
    """Returns Vmat (D, Dp) and Wmat (Dp, D) such that applying panel p is
       x <- x - (x @ Vmat[:, lo:hi]) @ Wmat[lo:hi, :]  ==  x H_lo ... H_{hi-1}."""
    D = U.shape[0]
    Uf = U.astype(jnp.float32)
    row = jnp.arange(D)[:, None]
    col = jnp.arange(D)[None, :]
    # Reflector v_j = U[j] masked to entries >= j (exactly what Hprod reads).
    V = jnp.where(col >= row, Uf, 0.0).T                       # (D, D); column j = v_j
    n_panels = -(-D // panel)
    v_blocks, w_blocks = [], []
    for p in range(n_panels):
        lo, hi = p * panel, min((p + 1) * panel, D)
        Vp = V[:, lo:hi]                                       # (D, Pp)
        S = jnp.dot(Vp.T, Vp, precision=jax.lax.Precision.HIGHEST)   # Gram (Pp, Pp)
        # Compact-WY:  H_lo...H_{hi-1} = I - Vp Tp Vp^T,
        #   Tp^{-1} = strict_upper(S) + diag(||v_j||^2 / 2)    (beta_j = 2/||v_j||^2)
        M = jnp.triu(S, 1) + jnp.diag(jnp.diag(S) * 0.5)
        Wp = jax.scipy.linalg.solve_triangular(M, Vp.T, lower=False)  # = Tp Vp^T  (Pp, D)
        pad = panel - (hi - lo)
        if pad:                                                # zero reflectors are no-ops
            Vp = jnp.pad(Vp, ((0, 0), (0, pad)))
            Wp = jnp.pad(Wp, ((0, pad), (0, 0)))
        v_blocks.append(Vp)
        w_blocks.append(Wp)
    Vmat = jnp.concatenate(v_blocks, axis=1) if n_panels > 1 else v_blocks[0]
    Wmat = jnp.concatenate(w_blocks, axis=0) if n_panels > 1 else w_blocks[0]
    return Vmat, Wmat


# ---------------------------------------------------------------------------
# Generation-aware VMEM budgeting and batch-tile selection.
# ---------------------------------------------------------------------------
def _vmem_capacity_bytes():
    try:
        return int(pltpu.get_tpu_info().vmem_capacity_bytes)   # 128 MiB v5e/v6e, 64 MiB v7x
    except Exception:
        return 64 * 1024 * 1024                                # conservative fallback


def _pick_batch_tile(B, D, Dp, panel, tile_budget_bytes):
    resident = 4 * 2 * (2 * D * Dp + Dp)          # double-buffered V, W (+ bias), f32
    per_row = 4 * (6 * D + 2 * panel)             # 2x in + 2x out tiles, f32 carry, Y temp
    tm_max = (tile_budget_bytes - resident) // per_row
    tm_max = max(8, min(int(tm_max), 2048))
    if B <= tm_max:
        half = B // 2
        if B >= 16 and B % 2 == 0 and half % 8 == 0:
            return half                           # >=2 tiles so both v7x TCs get work
        return B                                  # single full-extent tile (valid layout)
    # Largest multiple of 8 <= tm_max that divides B -> avoids the jnp.pad copy.
    cand = (min(tm_max, B) // 8) * 8
    while cand >= 8:
        if B % cand == 0:
            return cand
        cand -= 8
    return (min(tm_max, B) // 8) * 8              # no divisor; last tile gets padded


# ---------------------------------------------------------------------------
# Public forward.
# ---------------------------------------------------------------------------
def orthogonal_linear_forward(x, U, bias, *, block_batch=None, panel=None):
    """x: (B, D); U: (D, D); bias: (1, D) -> (B, D)."""
    B, D = x.shape
    assert U.shape == (D, D), "OrthogonalLinear is a square map"
    assert bias.shape == (1, D)

    if panel is None:
        panel = min(128, D)
    Vmat, Wmat = _wy_panels(U, panel)              # parameter-only, hoisted out of kernel
    Dp = Vmat.shape[1]

    vmem_cap = _vmem_capacity_bytes()
    vmem_limit = max(32 * 1024 * 1024, min((vmem_cap // 8) * 7, 120 * 1024 * 1024))
    if block_batch is None:
        block_batch = _pick_batch_tile(B, D, Dp, panel, (vmem_limit * 3) // 4)

    num_tiles = pl.cdiv(B, block_batch)
    Bp = num_tiles * block_batch
    x_in = x if Bp == B else jnp.pad(x, ((0, Bp - B), (0, 0)))  # rare: only if no divisor fits

    flops = 4 * Bp * D * Dp                                  # two matmuls per panel
    bytes_accessed = 4 * (2 * Bp * D + 2 * D * Dp + D)       # x in/out + V + W + bias

    out = pl.pallas_call(
        _make_ortho_kernel(Dp, panel),
        out_shape=jax.ShapeDtypeStruct((Bp, D), x.dtype),
        grid_spec=pltpu.PrefetchScalarGridSpec(
            num_scalar_prefetch=0,
            grid=(num_tiles,),
            in_specs=[
                pl.BlockSpec((block_batch, D), lambda i: (i, 0)),  # x tile (pipelined)
                pl.BlockSpec((D, Dp), lambda i: (0, 0)),           # V (VMEM resident)
                pl.BlockSpec((Dp, D), lambda i: (0, 0)),           # W = T V^T (resident)
                pl.BlockSpec((1, D), lambda i: (0, 0)),            # bias
            ],
            out_specs=pl.BlockSpec((block_batch, D), lambda i: (i, 0)),
        ),
        compiler_params=pltpu.CompilerParams(
            dimension_semantics=("parallel",),        # batch tiles are independent
            vmem_limit_bytes=int(vmem_limit),         # 112 MiB on v5e/v6e, 56 MiB on v7x
        ),
        cost_estimate=pl.CostEstimate(
            flops=flops, transcendentals=0, bytes_accessed=bytes_accessed
        ),
    )(x_in, Vmat, Wmat, bias.astype(jnp.float32))

    return out if Bp == B else out[:B]


# ---------------------------------------------------------------------------
# Pure-JAX reference (mirrors torch Hprod / OrthogonalLinear.forward exactly;
# written with elementwise ops so it is exact f32 regardless of matmul precision).
# ---------------------------------------------------------------------------
def _hprod_ref(x, u, k):
    d = x.shape[1]
    uk = u[d - k:]
    alpha = 2.0 * jnp.sum(x[:, d - k:] * uk[None, :], axis=1) / jnp.sum(uk * uk)
    upd = x[:, d - k:] - alpha[:, None] * uk[None, :]
    if k < d:
        return jnp.concatenate([x[:, : d - k], upd], axis=1)
    return upd


def orthogonal_linear_ref(x, U, bias):
    d = x.shape[1]
    for i in range(d):
        x = _hprod_ref(x, U[i], d - i)
    return x + bias


def init_orthogonal_linear_params(key, insize, bias=False):
    """U = triu(randn(insize, insize)); bias = zeros or uniform(-1/sqrt(fan_in), ...)."""
    ku, kb = jax.random.split(key)
    U = jnp.triu(jax.random.normal(ku, (insize, insize), jnp.float32))
    if bias:
        bound = 1.0 / math.sqrt(insize)
        b = jax.random.uniform(kb, (1, insize), jnp.float32, -bound, bound)
    else:
        b = jnp.zeros((1, insize), jnp.float32)
    return U, b


if __name__ == "__main__":
    key = jax.random.PRNGKey(0)
    kx, kp = jax.random.split(key)

    batch, dim = 16, 32                      # square map: insize == outsize == dim
    x = jax.random.normal(kx, (batch, dim), jnp.float32)
    U, bias = init_orthogonal_linear_params(kp, dim, bias=True)

    # Auto tile selection -> block_batch=8, grid=(2,), single WY panel of size 32.
    y = orthogonal_linear_forward(x, U, bias)
    y = jax.block_until_ready(y)

    y_ref = orthogonal_linear_ref(x, U, bias)
    assert y.shape == (batch, dim)
    max_err = float(jnp.max(jnp.abs(y - y_ref)))
    assert jnp.allclose(y, y_ref, atol=1e-3, rtol=1e-3), f"mismatch vs reference: {max_err}"

    print("KERNEL_OK")
</pallas_src>

<mosaic_0001>
module attributes {stable_mosaic.version = 11 : i64} {
  func.func @kernel(%arg0: i32, %arg1: memref<8x32xf32, #tpu.memory_space<vmem>>, %arg2: memref<32x32xf32, #tpu.memory_space<vmem>>, %arg3: memref<32x32xf32, #tpu.memory_space<vmem>>, %arg4: memref<1x32xf32, #tpu.memory_space<vmem>>, %arg5: memref<8x32xf32, #tpu.memory_space<vmem>>) attributes {dimension_semantics = [#tpu.dimension_semantics<parallel>], iteration_bounds = array<i64: 2>, scalar_prefetch = 0 : i64, scratch_operands = 0 : i64, tpu.core_type = #tpu.core_type<tc>, window_params = [{transform_indices = @transform_0, window_bounds = array<i64: 8, 32>}, {pipeline_mode = #tpu.pipeline_mode<synchronous>, transform_indices = @transform_1, window_bounds = array<i64: 32, 32>}, {pipeline_mode = #tpu.pipeline_mode<synchronous>, transform_indices = @transform_2, window_bounds = array<i64: 32, 32>}, {pipeline_mode = #tpu.pipeline_mode<synchronous>, transform_indices = @transform_3, window_bounds = array<i64: 1, 32>}, {transform_indices = @transform_4, window_bounds = array<i64: 8, 32>}]} {
    %c0 = arith.constant 0 : index
    %c0_0 = arith.constant 0 : index
    %0 = vector.load %arg1[%c0, %c0_0] : memref<8x32xf32, #tpu.memory_space<vmem>>, vector<8x32xf32>
    %c0_1 = arith.constant 0 : index
    %c0_2 = arith.constant 0 : index
    %1 = vector.load %arg2[%c0_1, %c0_2] : memref<32x32xf32, #tpu.memory_space<vmem>>, vector<32x32xf32>
    %c0_3 = arith.constant 0 : index
    %c0_4 = arith.constant 0 : index
    %2 = vector.load %arg3[%c0_3, %c0_4] : memref<32x32xf32, #tpu.memory_space<vmem>>, vector<32x32xf32>
    %cst = arith.constant dense<0.000000e+00> : vector<8x32xf32>
    %3 = tpu.matmul %0, %1, %cst {dimension_numbers = #tpu.dot_dimension_numbers<[1], [0], [0], [1], [0, 0, 1, 1], [], []>} : vector<8x32xf32>, vector<32x32xf32>, vector<8x32xf32> -> vector<8x32xf32>
    %cst_5 = arith.constant dense<0.000000e+00> : vector<8x32xf32>
    %4 = tpu.matmul %3, %2, %cst_5 {dimension_numbers = #tpu.dot_dimension_numbers<[1], [0], [0], [1], [0, 0, 1, 1], [], []>} : vector<8x32xf32>, vector<32x32xf32>, vector<8x32xf32> -> vector<8x32xf32>
    %5 = arith.subf %0, %4 : vector<8x32xf32>
    %c0_6 = arith.constant 0 : index
    %c0_7 = arith.constant 0 : index
    %6 = vector.load %arg4[%c0_6, %c0_7] : memref<1x32xf32, #tpu.memory_space<vmem>>, vector<1x32xf32>
    %7 = vector.broadcast %6 : vector<1x32xf32> to vector<8x32xf32>
    %8 = arith.addf %5, %7 : vector<8x32xf32>
    %c0_8 = arith.constant 0 : index
    %c0_9 = arith.constant 0 : index
    %9 = vector.load %arg5[%c0_8, %c0_9] : memref<8x32xf32, #tpu.memory_space<vmem>>, vector<8x32xf32>
    tpu.vector_store %arg5[%c0_8, %c0_9], %8 {strides = array<i32>} : memref<8x32xf32, #tpu.memory_space<vmem>>, vector<8x32xf32>,
    return
  }
  func.func @transform_0(%arg0: i32) -> (i32, i32) {
    %c0_i32 = arith.constant 0 : i32
    %c0_i32_0 = arith.constant 0 : i32
    return %arg0, %c0_i32 : i32, i32
  }
  func.func @transform_1(%arg0: i32) -> (i32, i32) {
    %c0_i32 = arith.constant 0 : i32
    %c0_i32_0 = arith.constant 0 : i32
    %c0_i32_1 = arith.constant 0 : i32
    return %c0_i32, %c0_i32_0 : i32, i32
  }
  func.func @transform_2(%arg0: i32) -> (i32, i32) {
    %c0_i32 = arith.constant 0 : i32
    %c0_i32_0 = arith.constant 0 : i32
    %c0_i32_1 = arith.constant 0 : i32
    return %c0_i32, %c0_i32_0 : i32, i32
  }
  func.func @transform_3(%arg0: i32) -> (i32, i32) {
    %c0_i32 = arith.constant 0 : i32
    %c0_i32_0 = arith.constant 0 : i32
    %c0_i32_1 = arith.constant 0 : i32
    return %c0_i32, %c0_i32_0 : i32, i32
  }
  func.func @transform_4(%arg0: i32) -> (i32, i32) {
    %c0_i32 = arith.constant 0 : i32
    %c0_i32_0 = arith.constant 0 : i32
    return %arg0, %c0_i32 : i32, i32
  }
}

</mosaic_0001>

<bundles_post_ra>
// kernel: tpu_custom_call.1
= control target key start
LH: loop header
LB: loop body
LE: loop exit
PB: predicated region body
PF: predicated region fallthrough
CT: control target
= control target key end

     0   :  { %9 = vsyncpa [#allocation3], 0  ;;  %s850_s0 = inlined_call_operand.hbm [shape: f32[16,32], index: 0, kind: input, shape index: {}]   ;;  %s851_s1 = inlined_call_operand.hbm [shape: f32[32,32], index: 1, kind: input, shape index: {}]   ;;  %s852_s2 = inlined_call_operand.hbm [shape: f32[32,32], index: 2, kind: input, shape index: {}]   ;;  %s853_s3 = inlined_call_operand.vmem [shape: f32[1,32], index: 3, kind: input, shape index: {}]   ;;  %s854_s4 = inlined_call_operand.hbm [shape: f32[16,32], index: 4, kind: output, shape index: {}]  }
   0x1   :  { %11 = vsyncpa [#allocation3 + $0x1], 0 }
   0x2   :  { %12 = vsyncpa [#allocation6], 0 }
   0x3   :  { %13 = vsyncpa [#allocation4], 0 }
   0x4   :  { %15 = vsyncpa [#allocation4 + $0x1], 0  ;;  %s695_s15 = smov 0   ;;  %s697_s16 = smov 0  }
   0x5   :  { %s699_s17 = smov 0   ;;  %s701_s18 = smov 0  }
   0x6 LB: > { %s152_s21 = sshll.u32 %s851_s1, 4  ;;  %s719_s22 = sadd.s32 4294967295, %s664_s18   ;;  %s664_s18 = sphi %s701_s18, %s865_s18   ;;  %s660_s17 = sphi %s699_s17, %s864_s17   ;;  %s656_s16 = sphi %s697_s16, %s863_s16   ;;  %s652_s15 = sphi %s695_s15, %s862_s15   ;;  %s153_s21 = int_to_ptr.hbm [resolvable:$true] %s152_s21 }
   0x7   : > { %p417_p0 = scmp.ge.s32.totalorder %s664_s18, 1  ;;  %p42_p1 = scmp.eq.s32.totalorder %s719_s22, 0 }
   0x8   : > { %p141_p2 = scmp.lt.s32.totalorder %s664_s18, 3  ;;  %s666_s24 = smov [#allocation5]  }
   0x9   : > { %s154_s25 = sshll.u32 %s666_s24, 4  ;;  %s166_s28 = sshll.u32 %s852_s2, 4  ;;  %s155_s25 = int_to_ptr.vmem [resolvable:$true] %s154_s25  ;;  %s167_s28 = int_to_ptr.hbm [resolvable:$true] %s166_s28 }
   0xa   : > { %p724_p3 = pnand %p417_p0, %p141_p2  ;;  %s667_s29 = smov [#allocation7]  }
   0xb   : > { %s168_s30 = sshll.u32 %s667_s29, 4  ;;  %s668_s5 = smov 128   ;;  %s169_s30 = int_to_ptr.vmem [resolvable:$true] %s168_s30 }
   0xc   : > { %p446_p4 = pneg %p724_p3  ;;  %s669_s6 = smov 8  }
   0xd   : > { %s416_s7 = sadd.s32 4294967294, %s664_s18   ;;  %s738_s8 = sadd.s32 1, %s664_s18  }
   0xe   : > { %p447_p6 = pnand %p446_p4, %p42_p1  ;;  %s25_s9 = ssub.s32 %s664_s18, %s738_s8 }
   0xf   : > { %s28_s10 = sadd.s32 1, %s660_s17  ;;  %p26_p7 = scmp.eq.s32.totalorder %s25_s9, 0 }
  0x10   : > { %449 = dma.hbm_to_vmem [thread:$0]  (!%p447_p6), %s153_s21, 512, %s155_s25, [#allocation6], %s668_s5, %s668_s5, %s669_s6  }
  0x11   : > { %452 = dma.hbm_to_vmem [thread:$0]  (!%p447_p6), %s167_s28, 512, %s169_s30, [#allocation6], %s668_s5, %s668_s5, %s669_s6  }
  0x12   : > { %p35_p8 = scmp.ne.s32.totalorder %s660_s17, %s656_s16  ;;  %p36_p9 = scmp.eq.s32.totalorder %s664_s18, 0 }
  0x13   : > { %p41_p10 = scmp.ne.s32.totalorder %s656_s16, %s652_s15  ;;  %p128_p13 = scmp.eq.s32.totalorder %s719_s22, 1 }
  0x14   : > { %s749_s11 = scalar_select %p26_p7, %s660_s17, %s28_s10  }
  0x15   : > { %p751_p11 = por %p36_p9, %p35_p8  ;;  %p757_p12 = por %p42_p1, %p41_p10 }
  0x16   : > { %p134_p0 = scmp.eq.s32.totalorder %s416_s7, 1  ;;  %p463_p2 = scmp.lt.s32.totalorder %s664_s18, 2 }
  0x17   : > { %s185_s14 = sand.u32 1, %s660_s17   ;;  %p764_p4 = por %p128_p13, %p35_p8 }
  0x18   : > { %p768_p6 = por %p134_p0, %p41_p10  ;;  %s421_s21 = sshll.u32 %s185_s14, 3 }
  0x19   : > { %s422_s24 = sshll.u32 %s664_s18, 3  ;;  %s189_s28 = scalar_lea.vmem [#allocation2], %s421_s21 }
  0x1a   : > { %s193_s27 = scalar_lea.hbm %s850_s0, %s422_s24  ;;  %s197_s29 = sshll.u32 %s189_s28, 4  ;;  %s198_s29 = int_to_ptr.vmem [resolvable:$true] %s197_s29 }
  0x1b   : > { %s195_s30 = sshll.u32 %s193_s27, 4  ;;  %p778_p7 = pnand %p463_p2, %p751_p11  ;;  %s196_s30 = int_to_ptr.hbm [resolvable:$true] %s195_s30 }
  0x1c   : > { %s186_s6 = scalar_lea.sflag [#allocation3], %s185_s14  ;;  %s564_s7 = sshra.s32 %s196_s30, 4  ;;  %s565_s7 = int_to_ptr.hbm [resolvable:$true] %s564_s7 }
  0x1d   : > { %s566_s9 = scalar_lea.hbm %s565_s7, 8  ;;  %p568_p9 = pneg %p778_p7 }
  0x1e   : > { %p567_p8 = scmp.ne.s32.totalorder %s565_s7, %s566_s9  ;;  %s571_s24 = scalar_lea.hbm %s850_s0, 16 }
  0x1f   : > { %p572_p11 = scmp.lt.s32.totalorder %s565_s7, %s850_s0  ;;  %p573_p0 = scmp.lt.s32.totalorder %s571_s24, %s566_s9 }
  0x20   : > { %p569_p10 = pnand %p568_p9, %p567_p8 }
  0x21   : > { %p574_p2 = por %p573_p0, %p572_p11 }
  0x22   : > { %p570_p13 = pneg %p569_p10 }
  0x24   : > { %p575_p5 = pnand %p574_p2, %p570_p13 }
  0x26   : > { %578 = shalt.err (!%p575_p5)
}
  0x27   : > { %456 = dma.hbm_to_vmem [thread:$0]  (!%p778_p7), %s196_s30, 128, %s198_s29, %s186_s6  }
  0x28   : > { %206 = sbr.rel (%p724_p3) target bundleno = 315 (0x13b), region = 36  ;;  %s795_s14 = sand.u32 (!%p724_p3), 1, %s656_s16  }
  0x29   : > { %s424_s26 = sshll.u32 (!%p724_p3), %s795_s14, 3  ;;  %s209_s27 = scalar_lea.sflag (!%p724_p3), [#allocation3], %s795_s14 }
  0x2a   : > { %s212_s28 = scalar_lea.vmem (!%p724_p3), [#allocation2], %s424_s26 }
  0x2d   : > { %639 = dma.done.wait (%p757_p12), %s209_s27, 128  }
  0x2e   : > { %641 = vsyncadd (%p757_p12), %s209_s27, 4294967168 }
  0x2f   : > { %643 = dma.done.wait (%p42_p1), [#allocation6], 1024  }
  0x30   : > { %645 = vsyncadd (%p42_p1), [#allocation6], 4294966272  ;;  %v252_v0 = vld [vmem:[#allocation5 + $0x18] sm:$0xff]  ;;  %v251_v1 = vld [vmem:[#allocation5 + $0x10] sm:$0xff]  ;;  %vm257_vm0 = vcmask 261120   ;;  %s431_s23 = sshll.u32 %s719_s22, 3 }
  0x31   : > { %273 = vmatpush.msra.mxu0 %v252_v0  ;;  %v256_v2 = vld [vmem:[#allocation7 + $0x18] sm:$0xff]  ;;  %v250_v3 = vld [vmem:[#allocation5 + $0x8] sm:$0xff]  ;;  %v255_v4 = vld [vmem:[#allocation7 + $0x10] sm:$0xff]  ;;  %s322_s30 = scalar_lea.hbm %s854_s4, %s431_s23  ;;  %s247_s7 = scalar_lea.vmem [#allocation8], %s424_s26 }
  0x32   : > { %296 = vmatpush.msra.mxu1 %v256_v2  ;;  %v254_v5 = vld [vmem:[#allocation7 + $0x8] sm:$0xff]  ;;  %v249_v6 = vld [vmem:[#allocation5] sm:$0xff]  ;;  %v248_v7 = vld [vmem:[%s212_s28] sm:$0xff]  ;;  %s324_s9 = sshll.u32 %s247_s7, 4  ;;  %s326_s10 = sshll.u32 %s322_s30, 4  ;;  %s325_s9 = int_to_ptr.vmem [resolvable:$true] %s324_s9  ;;  %s327_s10 = int_to_ptr.hbm [resolvable:$true] %s326_s10 }
  0x33   : > { %274 = vmatpush.msra.mxu0 %v251_v1  ;;  %v253_v8 = vld [vmem:[#allocation7] sm:$0xff]  ;;  %v503_v10 = vld [vmem:[%s853_s3] ss:$0 sm:$0xff]  ;;  %s312_s22 = scalar_lea.sflag [#allocation4], %s795_s14  ;;  %s608_s21 = sshra.s32 %s327_s10, 4  ;;  %s609_s21 = int_to_ptr.hbm [resolvable:$true] %s608_s21 }
  0x34   : > { %297 = vmatpush.msra.mxu1 %v255_v4  ;;  %s610_s24 = scalar_lea.hbm %s609_s21, 8  ;;  %s614_s26 = scalar_lea.hbm %s854_s4, 16 }
  0x35   : > { %275 = vmatpush.msra.mxu0 %v250_v3  ;;  %p611_p1 = scmp.ne.s32.totalorder %s609_s21, %s610_s24  ;;  %p615_p12 = scmp.lt.s32.totalorder %s609_s21, %s854_s4 }
  0x36   : > { %298 = vmatpush.msra.mxu1 %v254_v5  ;;  %p616_p7 = scmp.lt.s32.totalorder %s614_s26, %s610_s24 }
  0x37   : > { %276 = vmatpush.msra.mxu0 %v249_v6  ;;  %p612_p3 = pnand %p611_p1, %p764_p4 }
  0x38   : > { %428 = vmatmul.msk.f32.vlgmr.msra.gmra.mxu0 %vm257_vm0, %v248_v7  ;;  %299 = vmatpush.msra.mxu1 %v253_v8  ;;  %p617_p8 = por %p616_p7, %p615_p12 }
  0x39   : > { %p613_p5 = pneg %p612_p3 }
  0x3b   : > { %p618_p9 = pnand %p617_p8, %p613_p5 }
  0xb5   : > { %v278_v9 = vpop.f32.mrf.mxu0 }
  0xb6   : > { %429 = vmatmul.msk.f32.vlgmr.msra.gmra.mxu1 %vm257_vm0, %v278_v9 }
 0x133   : > { %v301_v11 = vpop.f32.mrf.mxu1 }
 0x134   : > { %v304_v12 = vsub.f32 %v248_v7, %v301_v11 }
 0x136   : > { %v309_v13 = vadd.f32 %v503_v10, %v304_v12 }
 0x138   : > { %310 = vst.msk [vmem:[%s247_s7] sm:$0xff] %vm257_vm0, %v309_v13 }
 0x139   : > { %621 = shalt.err (!%p618_p9)
}
 0x13a   : > { %444 = dma.vmem_to_hbm [thread:$0]  (%p764_p4), %s325_s9, 128, %s327_s10, %s312_s22  }
 0x13b PF: > { %s338_s14 = sand.u32 1, %s652_s15   ;;  %p861_p10 = scmp.ge.s32.totalorder %s664_s18, 2 }
 0x13c   : > { %s339_s23 = scalar_lea.sflag [#allocation4], %s338_s14 }
 0x13d   : > { %p458_p13 = pnand %p861_p10, %p768_p6 }
 0x13f   : > { %p459_p11 = pneg %p458_p13 }
 0x141   : > { %647 = dma.done.wait (%p459_p11), %s339_s23, 128  }
 0x142   : > { %649 = vsyncadd (%p459_p11), %s339_s23, 4294967168  ;;  %p18_p0 = scmp.ge.s32.totalorder %s738_s8, 4   ;;  %s862_s15 = smov %s656_s16 }
 0x143   : > { %s863_s16 = smov %s660_s17  ;;  %s864_s17 = smov %s749_s11 }
 0x144   : > { %s865_s18 = smov %s738_s8  ;;  %20 = sbr.rel (!%p18_p0) target bundleno = 6 (0x6), region = 89 }
 0x149   :  { %345 = vsyncpa [#allocation3], 1 }
 0x14a   :  { %347 = vsyncpa [#allocation3 + $0x1], 1 }
 0x14b   :  { %348 = vsyncpa [#allocation6], 1 }
 0x14c   :  { %349 = vsyncpa [#allocation4], 1 }
 0x14d   :  { %351 = vsyncpa [#allocation4 + $0x1], 1 }

</bundles_post_ra>
